<compile_context>
chip_gen: v5e
topology: v5e:2x2
jax: 0.10.0
libtpu: 0.0.40
codegen_flags: <defaults>
</compile_context>

<pallas_src>
import functools

import jax
import jax.numpy as jnp
from jax.experimental import pallas as pl
from jax.experimental.pallas import tpu as pltpu


# ---------------------------------------------------------------------------
# Module "configuration" (mirrors AppendIndex.__init__ arguments)
# ---------------------------------------------------------------------------
INDEX_A = 3            # band_kwargs: index_a (e.g. NIR)
INDEX_B = 2            # band_kwargs: index_b (e.g. RED)
INDEX_QA = 5           # index_qa
INDEX_WATER_MASK = 7   # index_water_mask
MASK_USING_QA = True
MASK_USING_WATER_MASK = True
FILL_VAL = 0.0

# VMEM sizing: conservative so the same tiling fits v5e/v6e (128 MiB) and
# v7x (64 MiB per TensorCore) with headroom for compiler scratch.
VMEM_BUDGET_BYTES = 32 * 1024 * 1024   # used to size the spatial tile
VMEM_LIMIT_BYTES = 48 * 1024 * 1024    # scoped VMEM limit handed to Mosaic


def _append_index_kernel(x_ref, o_ref, *, c, idx_a, idx_b, idx_qa, idx_wm,
                         mask_qa, mask_wm, fill_val):
    # x_ref: (1, C, TH, LANE) block in VMEM; o_ref: (1, C+1, TH, LANE) block.
    # Read only the planes the index needs (keeps vreg live range small).
    a = x_ref[0, idx_a]                       # (TH, LANE)
    b = x_ref[0, idx_b]                       # (TH, LANE)

    # _compute_index: normalized difference (concrete instantiation).
    index = (a - b) / (a + b)

    # _mask_index (QA + water mask), fused into a single select — both masks
    # replace with the same fill_val, so this is semantically identical to the
    # sequential torch.where calls.
    keep = None
    if mask_qa:
        keep = x_ref[0, idx_qa] == 0
    if mask_wm:
        wm_keep = x_ref[0, idx_wm] == 0
        keep = wm_keep if keep is None else jnp.logical_and(keep, wm_keep)
    if keep is not None:
        index = jnp.where(keep, index, jnp.asarray(fill_val, index.dtype))

    # _append_index: stream the passthrough copy channel-by-channel so at most
    # one channel plane is live in vregs at a time, then write the new channel.
    for ci in range(c):
        o_ref[0, ci] = x_ref[0, ci]
    o_ref[0, c] = index.astype(o_ref.dtype)


def _choose_tile_rows(rows, c, lane_w, itemsize, budget_bytes):
    """Largest sublane-aligned row tile whose double-buffered in+out fits."""
    per_row_bytes = 2 * (2 * c + 1) * lane_w * itemsize  # 2x = double buffer
    th = max(1, budget_bytes // per_row_bytes)
    if th >= rows:
        return rows                      # whole extent (always legal)
    th = max(8, (th // 8) * 8)           # keep (8, 128) block divisibility
    return min(th, rows)


def append_index(x):
    """x: float32 array of shape (B, C, H, W) -> (B, C+1, H, W)."""
    B, C, H, W = x.shape
    hw = H * W

    # Present a lane-dense last dim: fold (H, W) -> (rows, lane) with lane a
    # multiple of 128 so stores are unmasked full-vreg vst. The index compute
    # is purely elementwise over (H, W), so the fold is semantics-preserving.
    lane = None
    for cand in (512, 256, 128):
        if hw % cand == 0:
            lane = cand
            break
    if lane is not None:
        rows = hw // lane
        x_in = x.reshape(B, C, rows, lane)
    else:
        # Fallback: keep NCHW layout; W is the full (legal) last block dim.
        rows, lane = H, W
        x_in = x

    th = _choose_tile_rows(rows, C, lane, x.dtype.itemsize, VMEM_BUDGET_BYTES)
    grid = (B, pl.cdiv(rows, th))

    kernel = functools.partial(
        _append_index_kernel,
        c=C, idx_a=INDEX_A, idx_b=INDEX_B,
        idx_qa=INDEX_QA, idx_wm=INDEX_WATER_MASK,
        mask_qa=MASK_USING_QA, mask_wm=MASK_USING_WATER_MASK,
        fill_val=FILL_VAL,
    )

    out = pl.pallas_call(
        kernel,
        out_shape=jax.ShapeDtypeStruct((B, C + 1, rows, lane), x.dtype),
        grid_spec=pltpu.PrefetchScalarGridSpec(
            num_scalar_prefetch=0,
            grid=grid,
            in_specs=[pl.BlockSpec((1, C, th, lane),
                                   lambda b, r: (b, 0, r, 0))],
            out_specs=pl.BlockSpec((1, C + 1, th, lane),
                                   lambda b, r: (b, 0, r, 0)),
        ),
        compiler_params=pltpu.CompilerParams(
            dimension_semantics=("parallel", "parallel"),
            vmem_limit_bytes=VMEM_LIMIT_BYTES,
        ),
    )(x_in)

    return out.reshape(B, C + 1, H, W)


def append_index_ref(x):
    """Pure-JAX reference mirroring the PyTorch forward exactly."""
    a = x[..., INDEX_A, :, :]
    b = x[..., INDEX_B, :, :]
    index = (a - b) / (a + b)
    if MASK_USING_QA:
        qa = x[..., INDEX_QA, :, :]
        index = jnp.where(qa == 0, index, jnp.float32(FILL_VAL))
    if MASK_USING_WATER_MASK:
        wm = x[..., INDEX_WATER_MASK, :, :]
        index = jnp.where(wm == 0, index, jnp.float32(FILL_VAL))
    return jnp.concatenate([x, index[..., None, :, :]], axis=-3)


if __name__ == "__main__":
    key = jax.random.PRNGKey(0)
    B, C, H, W = 2, 8, 16, 16
    k1, k2 = jax.random.split(key)
    x = jax.random.uniform(k1, (B, C, H, W), dtype=jnp.float32,
                           minval=0.05, maxval=1.0)
    # Make the QA and water-mask bands binary (0/1) so the masking paths are
    # actually exercised, as they would be on real satellite data.
    qa_band = (jax.random.uniform(k2, (B, H, W)) > 0.5).astype(jnp.float32)
    wm_band = (jax.random.uniform(k2, (B, H, W)) > 0.7).astype(jnp.float32)
    x = x.at[:, INDEX_QA].set(qa_band)
    x = x.at[:, INDEX_WATER_MASK].set(wm_band)

    out = jax.block_until_ready(append_index(x))
    ref = jax.block_until_ready(append_index_ref(x))

    assert out.shape == (B, C + 1, H, W), out.shape
    assert jnp.allclose(out, ref, atol=1e-6, rtol=1e-6), "mismatch vs reference"
    print("KERNEL_OK")
</pallas_src>

<mosaic_0001>
module attributes {stable_mosaic.version = 11 : i64} {
  func.func @_append_index_kernel(%arg0: i32, %arg1: i32, %arg2: memref<1x8x1x256xf32, #tpu.memory_space<vmem>>, %arg3: memref<1x9x1x256xf32, #tpu.memory_space<vmem>>) attributes {dimension_semantics = [#tpu.dimension_semantics<parallel>, #tpu.dimension_semantics<parallel>], iteration_bounds = array<i64: 2, 1>, scalar_prefetch = 0 : i64, scratch_operands = 0 : i64, tpu.core_type = #tpu.core_type<tc>, window_params = [{transform_indices = @transform_0, window_bounds = array<i64: 1, 8, 1, 256>}, {transform_indices = @transform_1, window_bounds = array<i64: 1, 9, 1, 256>}]} {
    %c0 = arith.constant 0 : index
    %c3 = arith.constant 3 : index
    %c0_0 = arith.constant 0 : index
    %c0_1 = arith.constant 0 : index
    %0 = vector.load %arg2[%c0, %c3, %c0_0, %c0_1] : memref<1x8x1x256xf32, #tpu.memory_space<vmem>>, vector<1x1x1x256xf32>
    %1 = vector.shape_cast %0 : vector<1x1x1x256xf32> to vector<1x256xf32>
    %c0_2 = arith.constant 0 : index
    %c2 = arith.constant 2 : index
    %c0_3 = arith.constant 0 : index
    %c0_4 = arith.constant 0 : index
    %2 = vector.load %arg2[%c0_2, %c2, %c0_3, %c0_4] : memref<1x8x1x256xf32, #tpu.memory_space<vmem>>, vector<1x1x1x256xf32>
    %3 = vector.shape_cast %2 : vector<1x1x1x256xf32> to vector<1x256xf32>
    %4 = arith.subf %1, %3 : vector<1x256xf32>
    %5 = arith.addf %1, %3 : vector<1x256xf32>
    %6 = arith.divf %4, %5 : vector<1x256xf32>
    %c0_5 = arith.constant 0 : index
    %c5 = arith.constant 5 : index
    %c0_6 = arith.constant 0 : index
    %c0_7 = arith.constant 0 : index
    %7 = vector.load %arg2[%c0_5, %c5, %c0_6, %c0_7] : memref<1x8x1x256xf32, #tpu.memory_space<vmem>>, vector<1x1x1x256xf32>
    %8 = vector.shape_cast %7 : vector<1x1x1x256xf32> to vector<1x256xf32>
    %cst = arith.constant 0.000000e+00 : f32
    %9 = vector.broadcast %cst : f32 to vector<1x256xf32>
    %10 = arith.cmpf oeq, %8, %9 : vector<1x256xf32>
    %c0_8 = arith.constant 0 : index
    %c7 = arith.constant 7 : index
    %c0_9 = arith.constant 0 : index
    %c0_10 = arith.constant 0 : index
    %11 = vector.load %arg2[%c0_8, %c7, %c0_9, %c0_10] : memref<1x8x1x256xf32, #tpu.memory_space<vmem>>, vector<1x1x1x256xf32>
    %12 = vector.shape_cast %11 : vector<1x1x1x256xf32> to vector<1x256xf32>
    %cst_11 = arith.constant 0.000000e+00 : f32
    %13 = vector.broadcast %cst_11 : f32 to vector<1x256xf32>
    %14 = arith.cmpf oeq, %12, %13 : vector<1x256xf32>
    %15 = arith.andi %10, %14 : vector<1x256xi1>
    %cst_12 = arith.constant 0.000000e+00 : f32
    %16 = vector.broadcast %cst_12 : f32 to vector<1x256xf32>
    %17 = arith.select %15, %6, %16 : vector<1x256xi1>, vector<1x256xf32>
    %c0_13 = arith.constant 0 : index
    %c0_14 = arith.constant 0 : index
    %c0_15 = arith.constant 0 : index
    %c0_16 = arith.constant 0 : index
    %18 = vector.load %arg2[%c0_13, %c0_14, %c0_15, %c0_16] : memref<1x8x1x256xf32, #tpu.memory_space<vmem>>, vector<1x1x1x256xf32>
    %19 = vector.shape_cast %18 : vector<1x1x1x256xf32> to vector<1x256xf32>
    %c0_17 = arith.constant 0 : index
    %c0_18 = arith.constant 0 : index
    %c0_19 = arith.constant 0 : index
    %c0_20 = arith.constant 0 : index
    %20 = vector.load %arg3[%c0_17, %c0_18, %c0_19, %c0_20] : memref<1x9x1x256xf32, #tpu.memory_space<vmem>>, vector<1x1x1x256xf32>
    %21 = vector.shape_cast %20 : vector<1x1x1x256xf32> to vector<1x256xf32>
    %22 = vector.shape_cast %19 : vector<1x256xf32> to vector<1x1x1x256xf32>
    tpu.vector_store %arg3[%c0_17, %c0_18, %c0_19, %c0_20], %22 {strides = array<i32>} : memref<1x9x1x256xf32, #tpu.memory_space<vmem>>, vector<1x1x1x256xf32>,
    %c0_21 = arith.constant 0 : index
    %c1 = arith.constant 1 : index
    %c0_22 = arith.constant 0 : index
    %c0_23 = arith.constant 0 : index
    %23 = vector.load %arg2[%c0_21, %c1, %c0_22, %c0_23] : memref<1x8x1x256xf32, #tpu.memory_space<vmem>>, vector<1x1x1x256xf32>
    %24 = vector.shape_cast %23 : vector<1x1x1x256xf32> to vector<1x256xf32>
    %c0_24 = arith.constant 0 : index
    %c1_25 = arith.constant 1 : index
    %c0_26 = arith.constant 0 : index
    %c0_27 = arith.constant 0 : index
    %25 = vector.load %arg3[%c0_24, %c1_25, %c0_26, %c0_27] : memref<1x9x1x256xf32, #tpu.memory_space<vmem>>, vector<1x1x1x256xf32>
    %26 = vector.shape_cast %25 : vector<1x1x1x256xf32> to vector<1x256xf32>
    %27 = vector.shape_cast %24 : vector<1x256xf32> to vector<1x1x1x256xf32>
    tpu.vector_store %arg3[%c0_24, %c1_25, %c0_26, %c0_27], %27 {strides = array<i32>} : memref<1x9x1x256xf32, #tpu.memory_space<vmem>>, vector<1x1x1x256xf32>,
    %c0_28 = arith.constant 0 : index
    %c2_29 = arith.constant 2 : index
    %c0_30 = arith.constant 0 : index
    %c0_31 = arith.constant 0 : index
    %28 = vector.load %arg2[%c0_28, %c2_29, %c0_30, %c0_31] : memref<1x8x1x256xf32, #tpu.memory_space<vmem>>, vector<1x1x1x256xf32>
    %29 = vector.shape_cast %28 : vector<1x1x1x256xf32> to vector<1x256xf32>
    %c0_32 = arith.constant 0 : index
    %c2_33 = arith.constant 2 : index
    %c0_34 = arith.constant 0 : index
    %c0_35 = arith.constant 0 : index
    %30 = vector.load %arg3[%c0_32, %c2_33, %c0_34, %c0_35] : memref<1x9x1x256xf32, #tpu.memory_space<vmem>>, vector<1x1x1x256xf32>
    %31 = vector.shape_cast %30 : vector<1x1x1x256xf32> to vector<1x256xf32>
    %32 = vector.shape_cast %29 : vector<1x256xf32> to vector<1x1x1x256xf32>
    tpu.vector_store %arg3[%c0_32, %c2_33, %c0_34, %c0_35], %32 {strides = array<i32>} : memref<1x9x1x256xf32, #tpu.memory_space<vmem>>, vector<1x1x1x256xf32>,
    %c0_36 = arith.constant 0 : index
    %c3_37 = arith.constant 3 : index
    %c0_38 = arith.constant 0 : index
    %c0_39 = arith.constant 0 : index
    %33 = vector.load %arg2[%c0_36, %c3_37, %c0_38, %c0_39] : memref<1x8x1x256xf32, #tpu.memory_space<vmem>>, vector<1x1x1x256xf32>
    %34 = vector.shape_cast %33 : vector<1x1x1x256xf32> to vector<1x256xf32>
    %c0_40 = arith.constant 0 : index
    %c3_41 = arith.constant 3 : index
    %c0_42 = arith.constant 0 : index
    %c0_43 = arith.constant 0 : index
    %35 = vector.load %arg3[%c0_40, %c3_41, %c0_42, %c0_43] : memref<1x9x1x256xf32, #tpu.memory_space<vmem>>, vector<1x1x1x256xf32>
    %36 = vector.shape_cast %35 : vector<1x1x1x256xf32> to vector<1x256xf32>
    %37 = vector.shape_cast %34 : vector<1x256xf32> to vector<1x1x1x256xf32>
    tpu.vector_store %arg3[%c0_40, %c3_41, %c0_42, %c0_43], %37 {strides = array<i32>} : memref<1x9x1x256xf32, #tpu.memory_space<vmem>>, vector<1x1x1x256xf32>,
    %c0_44 = arith.constant 0 : index
    %c4 = arith.constant 4 : index
    %c0_45 = arith.constant 0 : index
    %c0_46 = arith.constant 0 : index
    %38 = vector.load %arg2[%c0_44, %c4, %c0_45, %c0_46] : memref<1x8x1x256xf32, #tpu.memory_space<vmem>>, vector<1x1x1x256xf32>
    %39 = vector.shape_cast %38 : vector<1x1x1x256xf32> to vector<1x256xf32>
    %c0_47 = arith.constant 0 : index
    %c4_48 = arith.constant 4 : index
    %c0_49 = arith.constant 0 : index
    %c0_50 = arith.constant 0 : index
    %40 = vector.load %arg3[%c0_47, %c4_48, %c0_49, %c0_50] : memref<1x9x1x256xf32, #tpu.memory_space<vmem>>, vector<1x1x1x256xf32>
    %41 = vector.shape_cast %40 : vector<1x1x1x256xf32> to vector<1x256xf32>
    %42 = vector.shape_cast %39 : vector<1x256xf32> to vector<1x1x1x256xf32>
    tpu.vector_store %arg3[%c0_47, %c4_48, %c0_49, %c0_50], %42 {strides = array<i32>} : memref<1x9x1x256xf32, #tpu.memory_space<vmem>>, vector<1x1x1x256xf32>,
    %c0_51 = arith.constant 0 : index
    %c5_52 = arith.constant 5 : index
    %c0_53 = arith.constant 0 : index
    %c0_54 = arith.constant 0 : index
    %43 = vector.load %arg2[%c0_51, %c5_52, %c0_53, %c0_54] : memref<1x8x1x256xf32, #tpu.memory_space<vmem>>, vector<1x1x1x256xf32>
    %44 = vector.shape_cast %43 : vector<1x1x1x256xf32> to vector<1x256xf32>
    %c0_55 = arith.constant 0 : index
    %c5_56 = arith.constant 5 : index
    %c0_57 = arith.constant 0 : index
    %c0_58 = arith.constant 0 : index
    %45 = vector.load %arg3[%c0_55, %c5_56, %c0_57, %c0_58] : memref<1x9x1x256xf32, #tpu.memory_space<vmem>>, vector<1x1x1x256xf32>
    %46 = vector.shape_cast %45 : vector<1x1x1x256xf32> to vector<1x256xf32>
    %47 = vector.shape_cast %44 : vector<1x256xf32> to vector<1x1x1x256xf32>
    tpu.vector_store %arg3[%c0_55, %c5_56, %c0_57, %c0_58], %47 {strides = array<i32>} : memref<1x9x1x256xf32, #tpu.memory_space<vmem>>, vector<1x1x1x256xf32>,
    %c0_59 = arith.constant 0 : index
    %c6 = arith.constant 6 : index
    %c0_60 = arith.constant 0 : index
    %c0_61 = arith.constant 0 : index
    %48 = vector.load %arg2[%c0_59, %c6, %c0_60, %c0_61] : memref<1x8x1x256xf32, #tpu.memory_space<vmem>>, vector<1x1x1x256xf32>
    %49 = vector.shape_cast %48 : vector<1x1x1x256xf32> to vector<1x256xf32>
    %c0_62 = arith.constant 0 : index
    %c6_63 = arith.constant 6 : index
    %c0_64 = arith.constant 0 : index
    %c0_65 = arith.constant 0 : index
    %50 = vector.load %arg3[%c0_62, %c6_63, %c0_64, %c0_65] : memref<1x9x1x256xf32, #tpu.memory_space<vmem>>, vector<1x1x1x256xf32>
    %51 = vector.shape_cast %50 : vector<1x1x1x256xf32> to vector<1x256xf32>
    %52 = vector.shape_cast %49 : vector<1x256xf32> to vector<1x1x1x256xf32>
    tpu.vector_store %arg3[%c0_62, %c6_63, %c0_64, %c0_65], %52 {strides = array<i32>} : memref<1x9x1x256xf32, #tpu.memory_space<vmem>>, vector<1x1x1x256xf32>,
    %c0_66 = arith.constant 0 : index
    %c7_67 = arith.constant 7 : index
    %c0_68 = arith.constant 0 : index
    %c0_69 = arith.constant 0 : index
    %53 = vector.load %arg2[%c0_66, %c7_67, %c0_68, %c0_69] : memref<1x8x1x256xf32, #tpu.memory_space<vmem>>, vector<1x1x1x256xf32>
    %54 = vector.shape_cast %53 : vector<1x1x1x256xf32> to vector<1x256xf32>
    %c0_70 = arith.constant 0 : index
    %c7_71 = arith.constant 7 : index
    %c0_72 = arith.constant 0 : index
    %c0_73 = arith.constant 0 : index
    %55 = vector.load %arg3[%c0_70, %c7_71, %c0_72, %c0_73] : memref<1x9x1x256xf32, #tpu.memory_space<vmem>>, vector<1x1x1x256xf32>
    %56 = vector.shape_cast %55 : vector<1x1x1x256xf32> to vector<1x256xf32>
    %57 = vector.shape_cast %54 : vector<1x256xf32> to vector<1x1x1x256xf32>
    tpu.vector_store %arg3[%c0_70, %c7_71, %c0_72, %c0_73], %57 {strides = array<i32>} : memref<1x9x1x256xf32, #tpu.memory_space<vmem>>, vector<1x1x1x256xf32>,
    %c0_74 = arith.constant 0 : index
    %c8 = arith.constant 8 : index
    %c0_75 = arith.constant 0 : index
    %c0_76 = arith.constant 0 : index
    %58 = vector.load %arg3[%c0_74, %c8, %c0_75, %c0_76] : memref<1x9x1x256xf32, #tpu.memory_space<vmem>>, vector<1x1x1x256xf32>
    %59 = vector.shape_cast %58 : vector<1x1x1x256xf32> to vector<1x256xf32>
    %60 = vector.shape_cast %17 : vector<1x256xf32> to vector<1x1x1x256xf32>
    tpu.vector_store %arg3[%c0_74, %c8, %c0_75, %c0_76], %60 {strides = array<i32>} : memref<1x9x1x256xf32, #tpu.memory_space<vmem>>, vector<1x1x1x256xf32>,
    return
  }
  func.func @transform_0(%arg0: i32, %arg1: i32) -> (i32, i32, i32, i32) {
    %c0_i32 = arith.constant 0 : i32
    %c0_i32_0 = arith.constant 0 : i32
    %c0_i32_1 = arith.constant 0 : i32
    return %arg0, %c0_i32, %arg1, %c0_i32_0 : i32, i32, i32, i32
  }
  func.func @transform_1(%arg0: i32, %arg1: i32) -> (i32, i32, i32, i32) {
    %c0_i32 = arith.constant 0 : i32
    %c0_i32_0 = arith.constant 0 : i32
    %c0_i32_1 = arith.constant 0 : i32
    return %arg0, %c0_i32, %arg1, %c0_i32_0 : i32, i32, i32, i32
  }
}

</mosaic_0001>

<bundles_post_ra>
// kernel: tpu_custom_call.1
= control target key start
LH: loop header
LB: loop body
LE: loop exit
PB: predicated region body
PF: predicated region fallthrough
CT: control target
= control target key end

     0   :  { %6 = vsyncpa [#allocation3], 0  ;;  %s713_s0 = inlined_call_operand.hbm [shape: f32[2,8,1,256], index: 0, kind: input, shape index: {}]   ;;  %s714_s1 = inlined_call_operand.hbm [shape: f32[2,9,1,256], index: 1, kind: output, shape index: {}]  }
   0x1   :  { %8 = vsyncpa [#allocation3 + $0x1], 0 }
   0x2   :  { %9 = vsyncpa [#allocation4], 0 }
   0x3   :  { %11 = vsyncpa [#allocation4 + $0x1], 0  ;;  %s544_s6 = smov 0   ;;  %s546_s7 = smov 0  }
   0x4   :  { %s548_s8 = smov 0   ;;  %s550_s9 = smov 0  }
   0x5   :  { %s552_s10 = smov 0   ;;  %s554_s11 = smov 0  }
   0x6 LB: > { %s317_s12 = sadd.s32 4294967295, %s528_s11   ;;  %s318_s13 = sadd.s32 4294967294, %s528_s11   ;;  %s528_s11 = sphi %s554_s11, %s17_s11   ;;  %s524_s10 = sphi %s552_s10, %s725_s10   ;;  %s520_s9 = sphi %s550_s9, %s724_s9   ;;  %s516_s8 = sphi %s548_s8, %s723_s8   ;;  %s512_s7 = sphi %s546_s7, %s722_s7   ;;  %s508_s6 = sphi %s544_s6, %s721_s6  }
   0x7   : > { %s29_s14 = sadd.s32 1, %s524_s10  ;;  %s38_s15 = sadd.s32 1, %s516_s8 }
   0x8   : > { %p31_p0 = scmp.ge.s32.totalorder %s29_s14, 2  ;;  %p45_p1 = scmp.ne.s32.totalorder %s516_s8, %s512_s7 }
   0x9   : > { %p46_p2 = scmp.eq.s32.totalorder %s528_s11, 0  ;;  %p51_p3 = scmp.ne.s32.totalorder %s512_s7, %s508_s6 }
   0xa   : > { %s727_s14 = smov (%p31_p0, %s29_s14), 0  ;;  %p52_p5 = scmp.eq.s32.totalorder %s317_s12, 0 }
   0xb   : > { %p585_p4 = por %p46_p2, %p45_p1  ;;  %s33_s17 = ssub.s32 %s524_s10, %s727_s14 }
   0xc   : > { %p77_p6 = scmp.eq.s32.totalorder %s317_s12, 1  ;;  %p36_p7 = scmp.eq.s32.totalorder %s33_s17, 0 }
   0xd   : > { %p591_p8 = por %p52_p5, %p51_p3  ;;  %p83_p10 = scmp.eq.s32.totalorder %s318_s13, 1 }
   0xe   : > { %p595_p9 = por %p77_p6, %p45_p1  ;;  %p320_p12 = scmp.ge.s32.totalorder %s528_s11, 2 }
   0xf   : > { %s600_s20 = scalar_select %p36_p7, %s516_s8, %s38_s15  }
  0x10   : > { %p602_p11 = por %p83_p10, %p51_p3  ;;  %p360_p13 = scmp.lt.s32.totalorder %s528_s11, 2 }
  0x11   : > { %s103_s22 = sand.u32 1, %s516_s8   ;;  %s322_s24 = sshll.u32 %s524_s10, 4 }
  0x12   : > { %s321_s23 = sshll.u32 %s103_s22, 4  ;;  %s113_s27 = scalar_lea.hbm %s713_s0, %s322_s24 }
  0x13   : > { %s107_s28 = scalar_lea.vmem [#allocation2], %s321_s23  ;;  %s114_s30 = sshll.u32 %s113_s27, 4  ;;  %s115_s30 = int_to_ptr.hbm [resolvable:$true] %s114_s30 }
  0x14   : > { %s116_s29 = sshll.u32 %s107_s28, 4  ;;  %p353_p0 = pnand %p360_p13, %p585_p4  ;;  %s117_s29 = int_to_ptr.vmem [resolvable:$true] %s116_s29 }
  0x15   : > { %p323_p1 = scmp.ge.s32.totalorder %s528_s11, 1  ;;  %s104_s2 = scalar_lea.sflag [#allocation3], %s103_s22 }
  0x16   : > { %s530_s3 = smov 32   ;;  %s531_s4 = smov 2  }
  0x17   : > { %355 = dma.hbm_to_vmem [thread:$0]  (!%p353_p0), %s115_s30, 256, %s117_s29, %s104_s2, %s530_s3, %s530_s3, %s531_s4  }
  0x18   : > { %p124_p2 = scmp.lt.s32.totalorder %s528_s11, 3 }
  0x1a   : > { %p125_p3 = pnand %p323_p1, %p124_p2 }
  0x1b   : > { %s618_s5 = sand.u32 (!%p125_p3), 1, %s512_s7  }
  0x1c   : > { %128 = sbr.rel (%p125_p3) target bundleno = 64 (0x40), region = 24  ;;  %s324_s12 = sshll.u32 (!%p125_p3), %s618_s5, 4 }
  0x1d   : > { %s131_s13 = scalar_lea.sflag (!%p125_p3), [#allocation3], %s618_s5  ;;  %s622_s15 = scalar_lea.vmem (!%p125_p3), [#allocation2], %s324_s12 }
  0x21   : > { %499 = dma.done.wait (%p591_p8), %s131_s13, 256  }
  0x22   : > { %501 = vsyncadd (%p591_p8), %s131_s13, 4294967040  ;;  %s346_s16 = smul.u32 18, %s618_s5  ;;  %v184_v0 = vlaneseq  ;;  %v183_v2 = vld [vmem:[%s622_s15] sm:$0x3]  ;;  %v329_v3 = vld [vmem:[%s622_s15 + $0x2] sm:$0x3] }
  0x23   : > { %v331_v4 = vld [vmem:[%s622_s15 + $0x4] sm:$0x3]  ;;  %v333_v5 = vld [vmem:[%s622_s15 + $0x6] sm:$0x3]  ;;  %v335_v6 = vld [vmem:[%s622_s15 + $0x8] sm:$0x3] }
  0x24   : > { %vm629_vm0 = vcmp.lt.s32.totalorder %v184_v0, 256  ;;  %s636_s17 = scalar_lea.vmem [#allocation5], %s346_s16  ;;  %v337_v7 = vld [vmem:[%s622_s15 + $0xa] sm:$0x3]  ;;  %v325_v8 = vld [vmem:[%s622_s15 + $0x6] sm:$0x3] }
  0x25   : > { %188 = vst.msk [vmem:[%s636_s17] sm:$0x3] %vm629_vm0, %v183_v2  ;;  %v339_v9 = vld [vmem:[%s622_s15 + $0xc] sm:$0x3]  ;;  %v326_v10 = vld [vmem:[%s622_s15 + $0x4] sm:$0x3] }
  0x26   : > { %330 = vst.msk [vmem:[%s636_s17 + $0x2] sm:$0x3] %vm629_vm0, %v329_v3  ;;  %v341_v11 = vld [vmem:[%s622_s15 + $0xe] sm:$0x3]  ;;  %v159_v12 = vadd.f32 %v326_v10, %v325_v8  ;;  %s347_s18 = smul.u32 18, %s520_s9  ;;  %v158_v21 = vsub.f32 %v325_v8, %v326_v10  ;;  %s229_s9 = sshll.u32 %s636_s17, 4  ;;  %s230_s9 = int_to_ptr.vmem [resolvable:$true] %s229_s9 }
  0x27   : > { %332 = vst.msk [vmem:[%s636_s17 + $0x4] sm:$0x3] %vm629_vm0, %v331_v4  ;;  %v327_v18 = vld [vmem:[%s622_s15 + $0xa] sm:$0x3]  ;;  %v328_v19 = vld [vmem:[%s622_s15 + $0xe] sm:$0x3] }
  0x28   : > { %334 = vst.msk [vmem:[%s636_s17 + $0x6] sm:$0x3] %vm629_vm0, %v333_v5  ;;  %414 = vrcp.f32 %v159_v12  ;;  %v171_v15 = vand.u32 2147483648, %v159_v12  ;;  %vm165_vm1 = vweird.f32 %v159_v12  ;;  %v169_v17 = vand.u32 2147483647, %v159_v12  ;;  %s228_s24 = scalar_lea.hbm %s714_s1, %s347_s18  ;;  %s216_s26 = scalar_lea.sflag [#allocation4], %s618_s5 }
  0x29   : > { %336 = vst.msk [vmem:[%s636_s17 + $0x8] sm:$0x3] %vm629_vm0, %v335_v6  ;;  %vm177_vm5 = vcmp.eq.f32.partialorder %v327_v18, 0.0  ;;  %vm180_vm6 = vcmp.eq.f32.partialorder %v328_v19, 0.0  ;;  %s231_s25 = sshll.u32 %s228_s24, 4  ;;  %s466_s2 = scalar_lea.hbm %s714_s1, 36  ;;  %s232_s25 = int_to_ptr.hbm [resolvable:$true] %s231_s25 }
  0x2a   : > { %338 = vst.msk [vmem:[%s636_s17 + $0xa] sm:$0x3] %vm629_vm0, %v337_v7  ;;  %v172_v22 = vor.u32 1.1754944e-38, %v171_v15  ;;  %vm170_vm4 = vcmp.eq.f32.partialorder %v169_v17, 8.507059e+37  ;;  %vm181_vm7 = vmand %vm177_vm5, %vm180_vm6  ;;  %s460_s27 = sshra.s32 %s232_s25, 4  ;;  %s461_s27 = int_to_ptr.hbm [resolvable:$true] %s460_s27 }
  0x2b   : > { %340 = vst.msk [vmem:[%s636_s17 + $0xc] sm:$0x3] %vm629_vm0, %v339_v9  ;;  %s462_s28 = scalar_lea.hbm %s461_s27, 18  ;;  %p467_p7 = scmp.lt.s32.totalorder %s461_s27, %s714_s1 }
  0x2c   : > { %342 = vst.msk [vmem:[%s636_s17 + $0xe] sm:$0x3] %vm629_vm0, %v341_v11  ;;  %p463_p4 = scmp.ne.s32.totalorder %s461_s27, %s462_s28  ;;  %p468_p8 = scmp.lt.s32.totalorder %s466_s2, %s462_s28 }
  0x2e   : > { %v415_v13 = vpop.eup %414  ;;  %p464_p5 = pnand %p463_p4, %p595_p9  ;;  %p469_p10 = por %p468_p8, %p467_p7 }
  0x2f   : > { %v161_v14 = vmul.f32 %v415_v13, %v159_v12  ;;  %vm166_vm2 = vweird.f32 %v415_v13 }
  0x30   : > { %vm167_vm3 = vmor %vm165_vm1, %vm166_vm2  ;;  %p465_p6 = pneg %p464_p5 }
  0x31   : > { %v162_v16 = vsub.f32 1.0, %v161_v14 }
  0x32   : > { %p470_p13 = pnand %p469_p10, %p465_p6 }
  0x33   : > { %v163_v20 = vmul.f32 %v415_v13, %v162_v16 }
  0x35   : > { %v164_v23 = vadd.f32 %v415_v13, %v163_v20 }
  0x37   : > { %v168_v24 = vsel %vm167_vm3, %v415_v13, %v164_v23 }
  0x38   : > { %v173_v25 = vsel %vm170_vm4, %v172_v22, %v168_v24 }
  0x39   : > { %v174_v26 = vmul.f32 %v173_v25, %v158_v21 }
  0x3b   : > { %v182_v27 = vsel %vm181_vm7, %v174_v26, 0.0 }
  0x3c   : > { %343 = vst.msk [vmem:[%s636_s17 + $0x10] sm:$0x3] %vm629_vm0, %v182_v27 }
  0x3d   : > { %473 = shalt.err (!%p470_p13)
}
  0x3e   : > { %s532_s5 = smov 32   ;;  %s533_s12 = smov 2  }
  0x3f   : > { %350 = dma.vmem_to_hbm [thread:$0]  (%p595_p9), %s230_s9, 288, %s232_s25, %s216_s26, %s532_s5, %s532_s5, %s533_s12  }
  0x40 PF: > { %s246_s13 = sand.u32 1, %s508_s6   ;;  %p357_p0 = pnand %p320_p12, %p602_p11 }
  0x41   : > { %s247_s15 = scalar_lea.sflag [#allocation4], %s246_s13 }
  0x42   : > { %p358_p1 = pneg %p357_p0 }
  0x44   : > { %503 = dma.done.wait (%p358_p1), %s247_s15, 288  }
  0x45   : > { %505 = vsyncadd (%p358_p1), %s247_s15, 4294967008  ;;  %s17_s11 = sadd.s32 1, %s528_s11   ;;  %s721_s6 = smov %s512_s7 }
  0x46   : > { %p14_p2 = scmp.ge.s32.totalorder %s17_s11, 4   ;;  %s722_s7 = smov %s516_s8 }
  0x47   : > { %s723_s8 = smov %s600_s20  ;;  %s724_s9 = smov %s524_s10 }
  0x48   : > { %s725_s10 = smov %s727_s14  ;;  %16 = sbr.rel (!%p14_p2) target bundleno = 6 (0x6), region = 84 }
  0x4d   :  { %253 = vsyncpa [#allocation3], 1 }
  0x4e   :  { %255 = vsyncpa [#allocation3 + $0x1], 1 }
  0x4f   :  { %256 = vsyncpa [#allocation4], 1 }
  0x50   :  { %258 = vsyncpa [#allocation4 + $0x1], 1 }

</bundles_post_ra>
